<compile_context>
chip_gen: v7x
topology: tpu7x:2x2x1
jax: 0.10.0
libtpu: 0.0.40
codegen_flags: <defaults>
</compile_context>

<pallas_src>
import jax
import jax.numpy as jnp
from jax.experimental import pallas as pl
from jax.experimental.pallas import tpu as pltpu


# ---------------------------------------------------------------------------
# Parameter / buffer setup (init-time glue, mirrors __init__)
# ---------------------------------------------------------------------------
def fourier_features(t, first, last, dim):
    """Sin/cos Fourier positional features: (L,) int -> (L, dim) f32."""
    # TODO(synk): exact FourierFeatures source was not provided; this is the
    # standard sinusoidal embedding with geometric periods in [first, last].
    half = dim // 2
    exponents = jnp.linspace(0.0, 1.0, half, dtype=jnp.float32)
    periods = jnp.float32(first) * (jnp.float32(last) / jnp.float32(first)) ** exponents
    ang = t.astype(jnp.float32)[:, None] / periods[None, :]        # (L, half)
    return jnp.concatenate([jnp.sin(ang), jnp.cos(ang)], axis=-1)  # (L, dim)


def build_pos_flat(A):
    """Init-time `pos` buffer, lane-dense flat layout: (L, L*units).

    pos_flat[i, j*units + k] = A[i, k]        for k <  half
                             = A[j, k - half] for k >= half
    Exactly the buffer the PyTorch __init__ materializes (reshaped).
    """
    A = A.astype(jnp.float32)
    L, hd = A.shape
    left = jnp.broadcast_to(A[:, None, :], (L, L, hd))
    right = jnp.broadcast_to(A[None, :, :], (L, L, hd))
    return jnp.concatenate([left, right], axis=-1).reshape(L, L * 2 * hd)


# ---------------------------------------------------------------------------
# Kernel 1 (default / small-L): forward() is literally out = alpha * pos
# ---------------------------------------------------------------------------
def scale_kernel(alpha_ref, pos_ref, out_ref):
    # alpha_ref: SMEM (1,) f32 ; pos_ref/out_ref: VMEM (TM, L*units) f32
    out_ref[...] = alpha_ref[0] * pos_ref[...]


# ---------------------------------------------------------------------------
# Kernel 2 (large-L): rebuild alpha*pos in VMEM, skipping the pos read.
# All index-dependent constants (sel, pat0, rt) are wrapper-precomputed.
# ---------------------------------------------------------------------------
def reconstruct_kernel(alpha_ref, pat0_ref, sel_ref, rt_ref, out_ref):
    # alpha_ref: SMEM (1,) f32
    # pat0_ref : VMEM (TM, units) f32   rows [A[i], 0...0]
    # sel_ref  : VMEM (units, W) bf16   exact 0/1 lane-replication matrix
    # rt_ref   : VMEM (1, W) f32        column template [0...0, A[j]] per lane group
    # out_ref  : VMEM (TM, W) f32       lane-dense rows of alpha*pos
    alpha = alpha_ref[0]

    # Row-dependent left half: replicate alpha*[A[i],0] across all L lane
    # groups with an exact hi/lo bf16 split matmul (sel is 0/1, so the MXU
    # result is (pat_hi + pat_lo) per selected element -> ~f32-exact) instead
    # of a Precision.HIGHEST f32 matmul (3-6x more vmatmul passes).
    pat = alpha * pat0_ref[...]                                    # (TM, units) f32
    pat_hi = pat.astype(jnp.bfloat16)
    pat_lo = (pat - pat_hi.astype(jnp.float32)).astype(jnp.bfloat16)
    sel = sel_ref[...]                                             # (units, W) bf16
    left = (jnp.dot(pat_hi, sel, preferred_element_type=jnp.float32)
            + jnp.dot(pat_lo, sel, preferred_element_type=jnp.float32))

    # Column-dependent right half: sublane broadcast of the precomputed
    # lane-dense template row, scaled once per block.
    out_ref[...] = left + alpha * rt_ref[...]                      # (TM,W)+(1,W)


# ---------------------------------------------------------------------------
# Wrappers
# ---------------------------------------------------------------------------
def _row_block(L, W, *, target_block_bytes):
    """Rows per grid step: whole L when small, else a multiple of 8 sized so a
    double-buffered in+out pair stays well under v5e's 16 MiB scoped VMEM."""
    if L * W * 4 <= target_block_bytes:
        return L
    rows = max(8, (target_block_bytes // (W * 4)) // 8 * 8)
    return min(L, rows)


def abspos_ff_scale(alpha, pos_flat, *, target_block_bytes=2 * 1024 * 1024):
    """forward(): alpha * pos, pos precomputed (the PyTorch-faithful path)."""
    pos_flat = pos_flat.astype(jnp.float32)
    L, W = pos_flat.shape
    TM = _row_block(L, W, target_block_bytes=target_block_bytes)
    grid = (pl.cdiv(L, TM),)
    return pl.pallas_call(
        scale_kernel,
        out_shape=jax.ShapeDtypeStruct((L, W), jnp.float32),
        grid=grid,
        in_specs=[
            pl.BlockSpec(memory_space=pltpu.MemorySpace.SMEM),     # alpha scalar
            pl.BlockSpec((TM, W), lambda i: (i, 0)),               # pos rows
        ],
        out_specs=pl.BlockSpec((TM, W), lambda i: (i, 0)),         # lane-dense rows
        compiler_params=pltpu.CompilerParams(
            dimension_semantics=("parallel",)),                    # v7x: 2 TCs split rows
    )(jnp.asarray(alpha, jnp.float32).reshape(1), pos_flat)


def abspos_ff_reconstruct(alpha, A, *, target_block_bytes=2 * 1024 * 1024):
    """forward() without reading pos from HBM (pays off only at large L)."""
    A = A.astype(jnp.float32)
    L, hd = A.shape
    units = 2 * hd
    W = L * units

    # Init-time glue (all tiny, O(L*units)):
    pat0 = jnp.concatenate([A, jnp.zeros_like(A)], axis=-1)                 # (L, units)
    rt = jnp.concatenate([jnp.zeros_like(A), A], axis=-1).reshape(1, W)     # (1, W)
    lane = jnp.arange(W, dtype=jnp.int32) % units
    sel = (lane[None, :] == jnp.arange(units, dtype=jnp.int32)[:, None])
    sel = sel.astype(jnp.bfloat16)                                          # exact 0/1

    TM = _row_block(L, W, target_block_bytes=target_block_bytes)
    grid = (pl.cdiv(L, TM),)
    return pl.pallas_call(
        reconstruct_kernel,
        out_shape=jax.ShapeDtypeStruct((L, W), jnp.float32),
        grid=grid,
        in_specs=[
            pl.BlockSpec(memory_space=pltpu.MemorySpace.SMEM),     # alpha scalar
            pl.BlockSpec((TM, units), lambda i: (i, 0)),           # pat0 rows
            pl.BlockSpec((units, W), lambda i: (0, 0)),            # sel (constant)
            pl.BlockSpec((1, W), lambda i: (0, 0)),                # rt  (constant)
        ],
        out_specs=pl.BlockSpec((TM, W), lambda i: (i, 0)),
        compiler_params=pltpu.CompilerParams(
            dimension_semantics=("parallel",)),
    )(jnp.asarray(alpha, jnp.float32).reshape(1), pat0, sel, rt)


def abspos_ff(alpha, A, pos_flat=None, *, reconstruct=None):
    """Full forward: returns alpha*pos with shape (L, L, units)."""
    A = A.astype(jnp.float32)
    L, hd = A.shape
    units = 2 * hd
    W = L * units
    if reconstruct is None:
        # Reconstruction only wins once the pos read itself is many MiB.
        reconstruct = (L * W * 4) > (16 * 1024 * 1024)
    if reconstruct:
        out_flat = abspos_ff_reconstruct(alpha, A)
    else:
        if pos_flat is None:
            pos_flat = build_pos_flat(A)
        out_flat = abspos_ff_scale(alpha, pos_flat)
    # Contiguous reshape back to the PyTorch (L, L, units) layout -- free.
    return out_flat.reshape(L, L, units)


# ---------------------------------------------------------------------------
# Driver
# ---------------------------------------------------------------------------
if __name__ == "__main__":
    UNITS = 8          # module's `units`
    MAX_SEQ_LEN = 16   # small stand-in for the default 120

    key = jax.random.PRNGKey(0)  # module has no random inputs (arange positions, alpha=0.01)
    _ = key

    # __init__ equivalents
    positions = jnp.arange(MAX_SEQ_LEN)
    A = fourier_features(positions, 1, 1000, UNITS // 2)          # (L, units//2)
    alpha = jnp.float32(0.01)                                     # nn.Parameter(0.01)
    pos_flat = build_pos_flat(A)                                  # init-time pos buffer

    # forward() via Pallas: default (precomputed-pos) path ...
    out = abspos_ff(alpha, A, pos_flat)
    out = jax.block_until_ready(out)
    # ... and the large-L reconstruction path, forced here to exercise it.
    out_rec = abspos_ff(alpha, A, reconstruct=True)
    out_rec = jax.block_until_ready(out_rec)

    # Pure-JAX reference of the same forward pass
    L, hd = A.shape
    pos_ref = jnp.concatenate(
        [jnp.broadcast_to(A[:, None, :], (L, L, hd)),
         jnp.broadcast_to(A[None, :, :], (L, L, hd))],
        axis=-1,
    )
    expected = alpha * pos_ref

    assert out.shape == (MAX_SEQ_LEN, MAX_SEQ_LEN, UNITS), out.shape
    err_scale = float(jnp.max(jnp.abs(out - expected)))
    err_rec = float(jnp.max(jnp.abs(out_rec - expected)))
    assert jnp.allclose(out, expected, atol=1e-6, rtol=1e-6), f"scale path mismatch: {err_scale}"
    assert jnp.allclose(out_rec, expected, atol=1e-5, rtol=1e-5), f"reconstruct path mismatch: {err_rec}"

    print("KERNEL_OK")
</pallas_src>

<mosaic_0001>
module attributes {stable_mosaic.version = 11 : i64} {
  func.func @scale_kernel(%arg0: i32, %arg1: memref<1xf32, #tpu.memory_space<smem>>, %arg2: memref<16x128xf32, #tpu.memory_space<vmem>>, %arg3: memref<16x128xf32, #tpu.memory_space<vmem>>) attributes {dimension_semantics = [#tpu.dimension_semantics<parallel>], iteration_bounds = array<i64: 1>, scalar_prefetch = 0 : i64, scratch_operands = 0 : i64, tpu.core_type = #tpu.core_type<tc>, window_params = [{transform_indices = @transform_0, window_bounds = array<i64: 1>}, {transform_indices = @transform_1, window_bounds = array<i64: 16, 128>}, {transform_indices = @transform_2, window_bounds = array<i64: 16, 128>}]} {
    %c0 = arith.constant 0 : index
    %0 = memref.load %arg1[%c0] : memref<1xf32, #tpu.memory_space<smem>>
    %c0_0 = arith.constant 0 : index
    %c0_1 = arith.constant 0 : index
    %1 = vector.load %arg2[%c0_0, %c0_1] : memref<16x128xf32, #tpu.memory_space<vmem>>, vector<16x128xf32>
    %2 = vector.broadcast %0 : f32 to vector<16x128xf32>
    %3 = arith.mulf %2, %1 : vector<16x128xf32>
    %c0_2 = arith.constant 0 : index
    %c0_3 = arith.constant 0 : index
    %4 = vector.load %arg3[%c0_2, %c0_3] : memref<16x128xf32, #tpu.memory_space<vmem>>, vector<16x128xf32>
    tpu.vector_store %arg3[%c0_2, %c0_3], %3 {strides = array<i32>} : memref<16x128xf32, #tpu.memory_space<vmem>>, vector<16x128xf32>,
    return
  }
  func.func @transform_0(%arg0: i32) -> i32 {
    %c0_i32 = arith.constant 0 : i32
    %c0_i32_0 = arith.constant 0 : i32
    return %c0_i32 : i32
  }
  func.func @transform_1(%arg0: i32) -> (i32, i32) {
    %c0_i32 = arith.constant 0 : i32
    %c0_i32_0 = arith.constant 0 : i32
    return %arg0, %c0_i32 : i32, i32
  }
  func.func @transform_2(%arg0: i32) -> (i32, i32) {
    %c0_i32 = arith.constant 0 : i32
    %c0_i32_0 = arith.constant 0 : i32
    return %arg0, %c0_i32 : i32, i32
  }
}

</mosaic_0001>

<bundles_post_ra>
// kernel: tpu_custom_call.1
= control target key start
LH: loop header
LB: loop body
LE: loop exit
PB: predicated region body
PF: predicated region fallthrough
CT: control target
= control target key end

     0   :  { %8 = vsyncpa [#allocation4], 0  ;;  %s156_s0 = inlined_call_operand.<no memory space> [shape: f32[1], index: 0, kind: input, shape index: {}]   ;;  %s157_s1 = inlined_call_operand.hbm [shape: f32[16,128], index: 1, kind: input, shape index: {}]   ;;  %s158_s2 = inlined_call_operand.hbm [shape: f32[16,128], index: 2, kind: output, shape index: {}]  }
   0x1   :  { %9 = vsyncpa [#allocation5], 0  ;;  %s104_s9 = smov [#allocation3]   ;;  %s56_s13 = scalar_lea.hbm %s157_s1, 256 }
   0x2   :  { %s17_s10 = sshll.u32 %s104_s9, 4  ;;  %p57_p0 = scmp.ne.s32.totalorder %s157_s1, %s56_s13  ;;  %s18_s10 = int_to_ptr.vmem [resolvable:$true] %s17_s10 }
   0x3   :  { %p60_p1 = scmp.lt.u32.totalorder %s56_s13, %s157_s1 }
   0x5   :  { %p62_p2 = pnand %p60_p1, %p57_p0 }
   0x7   :  { %65 = shalt.err (!%p62_p2)
}
   0x8   :  { %s66_s18 = scalar_lea.vmem %s18_s10, 256  ;;  %p71_p4 = scmp.lt.s32.totalorder %s18_s10, %s18_s10 }
   0x9   :  { %p67_p3 = scmp.ne.s32.totalorder %s18_s10, %s66_s18  ;;  %p72_p5 = scmp.lt.s32.totalorder %s66_s18, %s66_s18 }
   0xb   :  { %p73_p6 = por %p72_p5, %p71_p4 }
   0xd   :  { %p74_p7 = pnand %p73_p6, %p67_p3 }
   0xf   :  { %77 = shalt.err (!%p74_p7)
}
  0x10   :  { %s105_s19 = smov 128   ;;  %s106_s20 = smov 8  }
  0x11   :  { %23 = dma.hbm_to_vmem [thread:$0]  %s157_s1, 256, %s18_s10, [#allocation4], %s105_s19, %s105_s19, %s106_s20  }
  0x12   :  { %100 = dma.done.wait [#allocation4], 256  }
  0x13   :  { %101 = vsyncadd [#allocation4], 4294967040  ;;  %v30_v0 = vstv %s156_s0  ;;  %s107_s25 = smov [#allocation6]   ;;  %v28_v1 = vld [vmem:[#allocation3] sm:$0xff]  ;;  %v29_v2 = vld [vmem:[#allocation3 + $0x8] sm:$0xff] }
  0x14   :  { %s40_s26 = sshll.u32 %s107_s25, 4  ;;  %v31_v3 = vmul.f32 %v30_v0, %v28_v1  ;;  %v32_v4 = vmul.f32 %v30_v0, %v29_v2  ;;  %s41_s26 = int_to_ptr.vmem [resolvable:$true] %s40_s26 }
  0x15   :  { %s78_s27 = scalar_lea.vmem %s41_s26, 256  ;;  %p83_p9 = scmp.lt.s32.totalorder %s41_s26, %s41_s26 }
  0x16   :  { %33 = vst [vmem:[#allocation6] sm:$0xff] %v31_v3  ;;  %34 = vst [vmem:[#allocation6 + $0x8] sm:$0xff] %v32_v4  ;;  %p79_p8 = scmp.ne.s32.totalorder %s41_s26, %s78_s27  ;;  %p84_p10 = scmp.lt.s32.totalorder %s78_s27, %s78_s27 }
  0x18   :  { %p85_p11 = por %p84_p10, %p83_p9 }
  0x1a   :  { %p86_p12 = pnand %p85_p11, %p79_p8 }
  0x1c   :  { %89 = shalt.err (!%p86_p12)
}
  0x1d   :  { %s90_s0 = scalar_lea.hbm %s158_s2, 256 }
  0x1e   :  { %p91_p13 = scmp.ne.s32.totalorder %s158_s2, %s90_s0  ;;  %p94_p0 = scmp.lt.u32.totalorder %s90_s0, %s158_s2 }
  0x20   :  { %p96_p1 = pnand %p94_p0, %p91_p13 }
  0x22   :  { %99 = shalt.err (!%p96_p1)
}
  0x23   :  { %46 = dma.vmem_to_hbm [thread:$0]  %s41_s26, 256, %s158_s2, [#allocation5], %s105_s19, %s105_s19, %s106_s20  }
  0x24   :  { %102 = dma.done.wait [#allocation5], 256  }
  0x25   :  { %103 = vsyncadd [#allocation5], 4294967040 }
  0x26   :  { %50 = vsyncpa [#allocation4], 1 }
  0x27   :  { %51 = vsyncpa [#allocation5], 1 }

</bundles_post_ra>
